<compile_context>
chip_gen: v5e
topology: v5e:2x2
jax: 0.10.0
libtpu: 0.0.40
codegen_flags: <defaults>
</compile_context>

<pallas_src>
import numpy as np
import jax
import jax.numpy as jnp
from jax import lax
from jax.experimental import pallas as pl

# ---------------- problem sizes (small, consistent with the module) ----------
B = 2          # batch
L_ENC = 16     # encoder sequence length
L_DEC = 12     # decoder sequence length (label_len + pred_len)
ENC_IN = 4     # encoder input channels
DEC_IN = 4     # decoder input channels
D_MODEL = 32   # model dim
C_OUT = 4      # output channels
MA_KERNEL = 5  # moving-average window (odd, as in Autoformer)

DTYPE = jnp.float32
LANES = 128
SLAB_ROWS = 56          # 56 x 128 f32 = 28 KiB packed parameter slab
NEG_INF = -1e30         # additive mask value for cross-batch attention scores

# ---------------- packed weight-slab layout: name -> (row, col, nrows, ncols)
SLAB_LAYOUT = {
    # row group 0 (rows 0..31)
    "w2":    (0,   0, D_MODEL, D_MODEL),        # (32, 32)
    "wkv":   (0,  32, D_MODEL, 2 * D_MODEL),    # (32, 64)  [wk | wv]
    "wo_h":  (0,  96, D_MODEL, C_OUT),          # (32, 4)   wo @ wh
    # row group 1 (rows 32..55)
    "sdec":  (32,  0, B * L_DEC, B * L_DEC),    # (24, 24)  block-diag (I - MA)
    "abias": (32, 32, B * L_DEC, B * L_ENC),    # (24, 32)  batch-block mask
    "w1":    (32, 64, ENC_IN, D_MODEL),         # (4, 32)
    "wq_s":  (36, 64, DEC_IN, D_MODEL),         # (4, 32)   wq / sqrt(d_model)
    "b1":    (40, 64, 1, D_MODEL),              # (1, 32)
    "b2":    (41, 64, 1, D_MODEL),              # (1, 32)
    "bo_h":  (42, 64, 1, C_OUT),                # (1, 4)    bo @ wh + bh
}


# ---------------- fused kernel: decomp + encoder + decoder + head ------------
def fused_autoformer_kernel(xe_ref, xd_ref, w_ref, out_ref):
    w = w_ref[...]                               # (56, 128): one slab load

    def blk(name):
        r, c, nr, nc = SLAB_LAYOUT[name]
        return w[r:r + nr, c:c + nc]             # in-register static slice

    w2, wkv, wo_h = blk("w2"), blk("wkv"), blk("wo_h")
    sdec, abias = blk("sdec"), blk("abias")
    w1, wq_s = blk("w1"), blk("wq_s")
    b1, b2, bo_h = blk("b1"), blk("b2"), blk("bo_h")

    # --- encoder (batch folded into M): relu(x W1 + b1) W2 + b2 --------------
    xe = xe_ref[...]                                                   # (32, 4)
    h = jnp.maximum(
        jnp.dot(xe, w1, preferred_element_type=jnp.float32) + b1, 0.0)
    enc = jnp.dot(h, w2, preferred_element_type=jnp.float32) + b2      # (32, 32)

    # --- K/V projections fused as one matmul ---------------------------------
    kv = jnp.dot(enc, wkv, preferred_element_type=jnp.float32)         # (32, 64)
    k = kv[:, :D_MODEL]
    v = kv[:, D_MODEL:2 * D_MODEL]

    # --- series decomposition: seasonal = blockdiag(I - MA) @ x_dec ----------
    xd = xd_ref[...]                                                   # (24, 4)
    seasonal = jnp.dot(sdec, xd, preferred_element_type=jnp.float32)   # (24, 4)

    # --- single-head cross-attention (scale folded into wq_s) ----------------
    q = jnp.dot(seasonal, wq_s, preferred_element_type=jnp.float32)    # (24, 32)
    # q . k^T without transposing k (single MXU dot_general), then mask out
    # cross-batch key positions with the precomputed additive bias.
    scores = lax.dot_general(q, k, (((1,), (1,)), ((), ())),
                             preferred_element_type=jnp.float32) + abias
    scores = scores - jnp.max(scores, axis=-1, keepdims=True)
    p = jnp.exp(scores)
    attn = p / jnp.sum(p, axis=-1, keepdims=True)        # exact softmax
    o = jnp.dot(attn, v, preferred_element_type=jnp.float32)           # (24, 32)

    # trend_init is identically zero; combine_trend_seasonal only adds it back
    # -> elided.  Output head is folded into wo_h / bo_h at pack time.
    out_ref[...] = (
        jnp.dot(o, wo_h, preferred_element_type=jnp.float32) + bo_h
    ).astype(out_ref.dtype)


# ---------------- assembled forward: ONE gridless pallas_call ----------------
def assembled_autoformer_forward(x_enc, x_mark_enc, x_dec, x_mark_dec, w_slab,
                                 mask=None):
    del x_mark_enc, x_mark_dec, mask            # unused in the assembled forward
    xe = x_enc.reshape(B * L_ENC, ENC_IN)       # free contiguous reshape
    xd = x_dec.reshape(B * L_DEC, DEC_IN)
    out_flat = pl.pallas_call(
        fused_autoformer_kernel,
        out_shape=jax.ShapeDtypeStruct((B * L_DEC, C_OUT), DTYPE),
        # no grid / no BlockSpecs: all operands (~60 KiB) are VMEM-resident for
        # the single invocation; tiling / multi-buffering would only add cost.
    )(xe, xd, w_slab)
    return out_flat.reshape(B, L_DEC, C_OUT)


# ---------------- parameter init & packing -----------------------------------
def build_seasonal_matrix():
    """(I - MA) so that seasonal = S @ x == x - moving_average(x) with
    replicate padding at both ends (matches Autoformer series_decomp)."""
    pad = (MA_KERNEL - 1) // 2
    A = np.zeros((L_DEC, L_DEC), np.float32)
    for i in range(L_DEC):
        for t in range(i - pad, i + pad + 1):
            j = min(max(t, 0), L_DEC - 1)
            A[i, j] += 1.0 / MA_KERNEL
    return np.eye(L_DEC, dtype=np.float32) - A


def init_params(key):
    keys = jax.random.split(key, 8)
    s = 0.1
    return {
        "w1": s * jax.random.normal(keys[0], (ENC_IN, D_MODEL), DTYPE),
        "b1": jnp.zeros((1, D_MODEL), DTYPE),
        "w2": s * jax.random.normal(keys[1], (D_MODEL, D_MODEL), DTYPE),
        "b2": jnp.zeros((1, D_MODEL), DTYPE),
        "wq": s * jax.random.normal(keys[2], (DEC_IN, D_MODEL), DTYPE),
        "wk": s * jax.random.normal(keys[3], (D_MODEL, D_MODEL), DTYPE),
        "wv": s * jax.random.normal(keys[4], (D_MODEL, D_MODEL), DTYPE),
        "wo": s * jax.random.normal(keys[5], (D_MODEL, D_MODEL), DTYPE),
        "bo": jnp.zeros((1, D_MODEL), DTYPE),
        "wh": s * jax.random.normal(keys[6], (D_MODEL, C_OUT), DTYPE),
        "bh": jnp.zeros((1, C_OUT), DTYPE),
    }


def pack_weight_slab(params):
    """Pack all weights (with algebraic folds) + the block-diagonal
    decomposition matrix + the batch-block attention mask into ONE lane-dense
    (56, 128) f32 slab -> a single small DMA per call."""
    p = {k: np.asarray(v, np.float32) for k, v in params.items()}

    S = build_seasonal_matrix()
    sdec_bd = np.zeros((B * L_DEC, B * L_DEC), np.float32)
    abias = np.full((B * L_DEC, B * L_ENC), NEG_INF, np.float32)
    for b in range(B):
        sdec_bd[b * L_DEC:(b + 1) * L_DEC, b * L_DEC:(b + 1) * L_DEC] = S
        abias[b * L_DEC:(b + 1) * L_DEC, b * L_ENC:(b + 1) * L_ENC] = 0.0

    tensors = {
        "sdec": sdec_bd,
        "abias": abias,
        "w1": p["w1"], "b1": p["b1"],
        "w2": p["w2"], "b2": p["b2"],
        "wq_s": p["wq"] / np.sqrt(np.float32(D_MODEL)),   # fold softmax scale
        "wkv": np.concatenate([p["wk"], p["wv"]], axis=1),
        "wo_h": p["wo"] @ p["wh"],                        # fold output head
        "bo_h": p["bo"] @ p["wh"] + p["bh"],
    }

    slab = np.zeros((SLAB_ROWS, LANES), np.float32)
    for name, (r, c, nr, nc) in SLAB_LAYOUT.items():
        t = tensors[name]
        assert t.shape == (nr, nc), (name, t.shape, (nr, nc))
        slab[r:r + nr, c:c + nc] = t
    return jnp.asarray(slab)


# ---------------- pure-JAX reference (semantic check) ------------------------
def reference_forward(x_enc, x_dec, params):
    pad = (MA_KERNEL - 1) // 2
    front = jnp.repeat(x_dec[:, :1, :], pad, axis=1)
    end = jnp.repeat(x_dec[:, -1:, :], pad, axis=1)
    xp = jnp.concatenate([front, x_dec, end], axis=1)
    trend = sum(xp[:, j:j + L_DEC, :] for j in range(MA_KERNEL)) / MA_KERNEL
    seasonal = x_dec - trend

    h = jax.nn.relu(x_enc @ params["w1"] + params["b1"])
    enc_out = h @ params["w2"] + params["b2"]

    q = seasonal @ params["wq"]
    k = enc_out @ params["wk"]
    v = enc_out @ params["wv"]
    scores = (q @ jnp.swapaxes(k, -1, -2)) / (float(D_MODEL) ** 0.5)
    attn = jax.nn.softmax(scores, axis=-1)
    o = attn @ v
    dec_out = o @ params["wo"] + params["bo"]
    decoder_output = dec_out + jnp.zeros((B, L_DEC, D_MODEL), dtype=DTYPE)
    return decoder_output @ params["wh"] + params["bh"]


if __name__ == "__main__":
    root = jax.random.PRNGKey(0)
    k_par, k_enc, k_dec, k_me, k_md = jax.random.split(root, 5)

    params = init_params(k_par)
    w_slab = pack_weight_slab(params)

    x_enc = jax.random.normal(k_enc, (B, L_ENC, ENC_IN), DTYPE)
    x_dec = jax.random.normal(k_dec, (B, L_DEC, DEC_IN), DTYPE)
    x_mark_enc = jax.random.normal(k_me, (B, L_ENC, 4), DTYPE)   # time features (unused)
    x_mark_dec = jax.random.normal(k_md, (B, L_DEC, 4), DTYPE)   # time features (unused)

    out = assembled_autoformer_forward(x_enc, x_mark_enc, x_dec, x_mark_dec, w_slab)
    out = jax.block_until_ready(out)

    ref = reference_forward(x_enc, x_dec, params)
    assert out.shape == (B, L_DEC, C_OUT)
    assert jnp.allclose(out, ref, atol=1e-4, rtol=1e-4), "mismatch vs reference"

    print("KERNEL_OK")
</pallas_src>

<mosaic_0001>
module attributes {stable_mosaic.version = 11 : i64} {
  func.func @fused_autoformer_kernel(%arg0: memref<32x4xf32, #tpu.memory_space<vmem>>, %arg1: memref<24x4xf32, #tpu.memory_space<vmem>>, %arg2: memref<56x128xf32, #tpu.memory_space<vmem>>, %arg3: memref<24x4xf32, #tpu.memory_space<vmem>>) attributes {dimension_semantics = [], scalar_prefetch = 0 : i64, scratch_operands = 0 : i64, tpu.core_type = #tpu.core_type<tc>} {
    %c0 = arith.constant 0 : index
    %c0_0 = arith.constant 0 : index
    %0 = vector.load %arg2[%c0, %c0_0] : memref<56x128xf32, #tpu.memory_space<vmem>>, vector<56x128xf32>
    %1 = vector.extract_strided_slice %0 {offsets = [0, 0], sizes = [32, 32], strides = [1, 1]} : vector<56x128xf32> to vector<32x32xf32>
    %2 = vector.extract_strided_slice %0 {offsets = [0, 32], sizes = [32, 64], strides = [1, 1]} : vector<56x128xf32> to vector<32x64xf32>
    %3 = vector.extract_strided_slice %0 {offsets = [0, 96], sizes = [32, 4], strides = [1, 1]} : vector<56x128xf32> to vector<32x4xf32>
    %4 = vector.extract_strided_slice %0 {offsets = [32, 0], sizes = [24, 24], strides = [1, 1]} : vector<56x128xf32> to vector<24x24xf32>
    %5 = vector.extract_strided_slice %0 {offsets = [32, 32], sizes = [24, 32], strides = [1, 1]} : vector<56x128xf32> to vector<24x32xf32>
    %6 = vector.extract_strided_slice %0 {offsets = [32, 64], sizes = [4, 32], strides = [1, 1]} : vector<56x128xf32> to vector<4x32xf32>
    %7 = vector.extract_strided_slice %0 {offsets = [36, 64], sizes = [4, 32], strides = [1, 1]} : vector<56x128xf32> to vector<4x32xf32>
    %8 = vector.extract_strided_slice %0 {offsets = [40, 64], sizes = [1, 32], strides = [1, 1]} : vector<56x128xf32> to vector<1x32xf32>
    %9 = vector.extract_strided_slice %0 {offsets = [41, 64], sizes = [1, 32], strides = [1, 1]} : vector<56x128xf32> to vector<1x32xf32>
    %10 = vector.extract_strided_slice %0 {offsets = [42, 64], sizes = [1, 4], strides = [1, 1]} : vector<56x128xf32> to vector<1x4xf32>
    %c0_1 = arith.constant 0 : index
    %c0_2 = arith.constant 0 : index
    %11 = vector.load %arg0[%c0_1, %c0_2] : memref<32x4xf32, #tpu.memory_space<vmem>>, vector<32x4xf32>
    %cst = arith.constant dense<0.000000e+00> : vector<32x32xf32>
    %12 = tpu.matmul %11, %6, %cst {dimension_numbers = #tpu.dot_dimension_numbers<[1], [0], [0], [1], [0, 0, 1, 1], [], []>} : vector<32x4xf32>, vector<4x32xf32>, vector<32x32xf32> -> vector<32x32xf32>
    %13 = vector.broadcast %8 : vector<1x32xf32> to vector<32x32xf32>
    %14 = arith.addf %12, %13 : vector<32x32xf32>
    %cst_3 = arith.constant 0.000000e+00 : f32
    %15 = vector.broadcast %cst_3 : f32 to vector<32x32xf32>
    %16 = arith.maximumf %14, %15 : vector<32x32xf32>
    %cst_4 = arith.constant dense<0.000000e+00> : vector<32x32xf32>
    %17 = tpu.matmul %16, %1, %cst_4 {dimension_numbers = #tpu.dot_dimension_numbers<[1], [0], [0], [1], [0, 0, 1, 1], [], []>} : vector<32x32xf32>, vector<32x32xf32>, vector<32x32xf32> -> vector<32x32xf32>
    %18 = vector.broadcast %9 : vector<1x32xf32> to vector<32x32xf32>
    %19 = arith.addf %17, %18 : vector<32x32xf32>
    %cst_5 = arith.constant dense<0.000000e+00> : vector<32x64xf32>
    %20 = tpu.matmul %19, %2, %cst_5 {dimension_numbers = #tpu.dot_dimension_numbers<[1], [0], [0], [1], [0, 0, 1, 1], [], []>} : vector<32x32xf32>, vector<32x64xf32>, vector<32x64xf32> -> vector<32x64xf32>
    %21 = vector.extract_strided_slice %20 {offsets = [0, 0], sizes = [32, 32], strides = [1, 1]} : vector<32x64xf32> to vector<32x32xf32>
    %22 = vector.extract_strided_slice %20 {offsets = [0, 32], sizes = [32, 32], strides = [1, 1]} : vector<32x64xf32> to vector<32x32xf32>
    %c0_6 = arith.constant 0 : index
    %c0_7 = arith.constant 0 : index
    %23 = vector.load %arg1[%c0_6, %c0_7] : memref<24x4xf32, #tpu.memory_space<vmem>>, vector<24x4xf32>
    %cst_8 = arith.constant dense<0.000000e+00> : vector<24x4xf32>
    %24 = tpu.matmul %4, %23, %cst_8 {dimension_numbers = #tpu.dot_dimension_numbers<[1], [0], [0], [1], [0, 0, 1, 1], [], []>} : vector<24x24xf32>, vector<24x4xf32>, vector<24x4xf32> -> vector<24x4xf32>
    %cst_9 = arith.constant dense<0.000000e+00> : vector<24x32xf32>
    %25 = tpu.matmul %24, %7, %cst_9 {dimension_numbers = #tpu.dot_dimension_numbers<[1], [0], [0], [1], [0, 0, 1, 1], [], []>} : vector<24x4xf32>, vector<4x32xf32>, vector<24x32xf32> -> vector<24x32xf32>
    %cst_10 = arith.constant dense<0.000000e+00> : vector<24x32xf32>
    %26 = tpu.matmul %25, %21, %cst_10 {dimension_numbers = #tpu.dot_dimension_numbers<[1], [1], [0], [0], [0, 0, 1, 0], [], []>} : vector<24x32xf32>, vector<32x32xf32>, vector<24x32xf32> -> vector<24x32xf32>
    %27 = arith.addf %26, %5 : vector<24x32xf32>
    %cst_11 = arith.constant dense<0xFF800000> : vector<24xf32>
    %28 = vector.multi_reduction <maximumf>, %27, %cst_11 [1] : vector<24x32xf32> to vector<24xf32>
    %29 = vector.shape_cast %28 : vector<24xf32> to vector<24x1xf32>
    %30 = vector.broadcast %29 : vector<24x1xf32> to vector<24x32xf32>
    %31 = arith.subf %27, %30 : vector<24x32xf32>
    %32 = math.exp %31 : vector<24x32xf32>
    %cst_12 = arith.constant dense<0.000000e+00> : vector<24xf32>
    %33 = vector.multi_reduction <add>, %32, %cst_12 [1] : vector<24x32xf32> to vector<24xf32>
    %34 = vector.shape_cast %33 : vector<24xf32> to vector<24x1xf32>
    %35 = vector.broadcast %34 : vector<24x1xf32> to vector<24x32xf32>
    %36 = arith.divf %32, %35 : vector<24x32xf32>
    %cst_13 = arith.constant dense<0.000000e+00> : vector<24x32xf32>
    %37 = tpu.matmul %36, %22, %cst_13 {dimension_numbers = #tpu.dot_dimension_numbers<[1], [0], [0], [1], [0, 0, 1, 1], [], []>} : vector<24x32xf32>, vector<32x32xf32>, vector<24x32xf32> -> vector<24x32xf32>
    %cst_14 = arith.constant dense<0.000000e+00> : vector<24x4xf32>
    %38 = tpu.matmul %37, %3, %cst_14 {dimension_numbers = #tpu.dot_dimension_numbers<[1], [0], [0], [1], [0, 0, 1, 1], [], []>} : vector<24x32xf32>, vector<32x4xf32>, vector<24x4xf32> -> vector<24x4xf32>
    %39 = vector.broadcast %10 : vector<1x4xf32> to vector<24x4xf32>
    %40 = arith.addf %38, %39 : vector<24x4xf32>
    %c0_15 = arith.constant 0 : index
    %c0_16 = arith.constant 0 : index
    %41 = vector.load %arg3[%c0_15, %c0_16] : memref<24x4xf32, #tpu.memory_space<vmem>>, vector<24x4xf32>
    tpu.vector_store %arg3[%c0_15, %c0_16], %40 {strides = array<i32>} : memref<24x4xf32, #tpu.memory_space<vmem>>, vector<24x4xf32>,
    return
  }
}

</mosaic_0001>

<bundles_post_ra>
// kernel: tpu_custom_call.1
= control target key start
LH: loop header
LB: loop body
LE: loop exit
PB: predicated region body
PF: predicated region fallthrough
CT: control target
= control target key end

     0   :  { %s576_s14 = smov 64   ;;  %vm46_vm0 = vcmask 1043456   ;;  %vm33_vm1 = vcmask 31744   ;;  %s577_s21 = smov 96   ;;  %vm189_vm2 = vcmask 195584   ;;  %vm87_vm3 = vcmask 261120   ;;  %s727_s2 = inlined_call_operand.vmem [shape: f32[56,128], index: 2, kind: input, shape index: {}]   ;;  %s728_s0 = inlined_call_operand.vmem [shape: f32[32,4], index: 0, kind: input, shape index: {}]   ;;  %s729_s1 = inlined_call_operand.vmem [shape: f32[24,4], index: 1, kind: input, shape index: {}]   ;;  %s730_s3 = inlined_call_operand.vmem [shape: f32[24,4], index: 3, kind: output, shape index: {}]  }
   0x1   :  { %v18_v0 = vld [vmem:[%s727_s2 + $0x20] sm:$0xff]  ;;  %v606_v1 = vld [vmem:[%s727_s2 + $0x28] sm:$0xff]  ;;  %v17_v3 = vld [vmem:[%s727_s2 + $0x18] sm:$0xff] }
   0x2   :  { %27 = vrot.lane.b32.xlu0 %v18_v0, %s576_s14  ;;  %v25_v2 = vperm.slane %v606_v1, 0  ;;  %112 = vmatpush.msra.mxu1 %v17_v3  ;;  %v21_v4 = vld [vmem:[%s728_s0] sm:$0xff]  ;;  %v22_v6 = vld [vmem:[%s728_s0 + $0x8] sm:$0xff]  ;;  %v23_v7 = vld [vmem:[%s728_s0 + $0x10] sm:$0xff]  ;;  %v82_v16 = vperm.slane %v606_v1, 1  ;;  %v224_v22 = vrot.slane %v18_v0, 4 }
   0x3   :  { %v24_v8 = vld [vmem:[%s728_s0 + $0x18] sm:$0xff]  ;;  %v16_v9 = vld [vmem:[%s727_s2 + $0x10] sm:$0xff]  ;;  %v15_v10 = vld [vmem:[%s727_s2 + $0x8] sm:$0xff] }
   0x4   :  { %113 = vmatpush.msra.mxu1 %v16_v9  ;;  %v637_v11 = vpack.i.bf16 %v16_v9, %v17_v3  ;;  %v14_v12 = vld [vmem:[%s727_s2] sm:$0xff]  ;;  %v188_v14 = vld [vmem:[%s729_s1 + $0x10] sm:$0xff]  ;;  %v187_v15 = vld [vmem:[%s729_s1 + $0x8] sm:$0xff]  ;;  %84 = vrot.lane.b32.xlu2 %v82_v16, %s576_s14 }
   0x5   :  { %v644_v13 = vpack.i.bf16 %v14_v12, %v15_v10  ;;  %211 = vmatpush.msra.mxu3 %v188_v14  ;;  %v186_v18 = vld [vmem:[%s729_s1] sm:$0xff]  ;;  %v20_v26 = vld [vmem:[%s727_s2 + $0x30] sm:$0xff]  ;;  %s578_s2 = smov 32  }
   0x6   :  { %114 = vmatpush.msra.mxu1 %v15_v10  ;;  %535 = vrot.lane.b32.xlu1 %v637_v11, %s577_s21 }
   0x7   :  { %212 = vmatpush.msra.mxu3 %v187_v15 }
   0x8   :  { %115 = vmatpush.msra.mxu1 %v14_v12 }
   0x9   :  { %213 = vmatpush.msra.mxu3 %v186_v18 }
   0xa   :  { %30 = vrot.lane.b32.xlu0 %v25_v2, %s576_s14  ;;  %511 = vmatmul.msk.f32.vlgmr.msra.gmra.mxu3 %vm189_vm2, %v18_v0 }
   0xc   :  { %225 = vrot.lane.b32.xlu2 %v224_v22, %s576_s14 }
   0xe   :  { %540 = vrot.lane.b32.xlu1 %v644_v13, %s577_s21 }
  0x12   :  { %264 = vrot.lane.b32.xlu0 %v18_v0, %s577_s21  ;;  %512 = vmatmul.msk.f32.gmra.mxu3 %vm189_vm2, %v606_v1 }
  0x14   :  { %268 = vrot.lane.b32.xlu2 %v20_v26, %s577_s21 }
  0x16   :  { %266 = vrot.lane.b32.xlu1 %v606_v1, %s577_s21 }
  0x1a   :  { %513 = vmatmul.msk.f32.gmra.mxu3 %vm189_vm2, %v20_v26 }
  0x5e   :  { %v85_v39 = vpop.permute.xlu2 %84 }
  0x66   :  { %v226_v40 = vpop.permute.xlu2 %225 }
  0x67   :  { %514 = vmatpush.msk.msrb.mxu3 %vm46_vm0, %v226_v40 }
  0x74   :  { %v28_v5 = vpop.permute.xlu0 %27 }
  0x75   :  { %498 = vmatpush.msk.msra.mxu0 %vm46_vm0, %v28_v5  ;;  %v269_v5 = vpop.permute.xlu2 %268 }
  0x76   :  { %499 = vmatmul.msk.f32.vlgmr.msra.gmra.mxu0 %vm33_vm1, %v21_v4 }
  0x78   :  { %v536_v33 = vpop.permute.xlu1 %535 }
  0x79   :  { %v537_v34 = vunpack.i.l.bf16 %v536_v33  ;;  %v538_v35 = vunpack.i.h.bf16 %v536_v33 }
  0x7b   :  { %169 = vmatpush.msra.mxu2 %v537_v34 }
  0x7c   :  { %v31_v17 = vpop.permute.xlu0 %30 }
  0x7d   :  { %170 = vmatpush.msra.mxu2 %v538_v35 }
  0x7e   :  { %500 = vmatmul.msk.f32.gmra.mxu0 %vm33_vm1, %v22_v6 }
  0x80   :  { %v541_v36 = vpop.permute.xlu1 %540 }
  0x81   :  { %v542_v37 = vunpack.i.l.bf16 %v541_v36  ;;  %v543_v38 = vunpack.i.h.bf16 %v541_v36 }
  0x83   :  { %171 = vmatpush.msra.mxu2 %v542_v37 }
  0x84   :  { %v265_v60 = vpop.permute.xlu0 %264 }
  0x85   :  { %172 = vmatpush.msra.mxu2 %v543_v38 }
  0x86   :  { %501 = vmatmul.msk.f32.gmra.mxu0 %vm33_vm1, %v23_v7 }
  0x88   :  { %v267_v0 = vpop.permute.xlu1 %266 }
  0x8d   :  { %v215_v43 = vpop.f32.mrf.mxu3 }
  0x8e   :  { %502 = vmatmul.msk.f32.gmra.mxu0 %vm33_vm1, %v24_v8  ;;  %515 = vmatmul.msk.f32.vlgmr.msrb.gmra.mxu3 %vm33_vm1, %v215_v43 }
  0x95   :  { %v218_v46 = vpop.f32.mrf.mxu3 }
  0x96   :  { %516 = vmatmul.msk.f32.gmra.mxu3 %vm33_vm1, %v218_v46 }
  0x9d   :  { %v221_v49 = vpop.f32.mrf.mxu3 }
  0x9e   :  { %517 = vmatmul.msk.f32.gmra.mxu3 %vm33_vm1, %v221_v49 }
  0xf3   :  { %v66_v19 = vpop.f32.mrf.mxu0 }
  0xf4   :  { %v67_v20 = vadd.f32 %v66_v19, %v31_v17 }
  0xf6   :  { %v78_v21 = vmax.f32 %v67_v20, 0.0 }
  0xf8   :  { %503 = vmatmul.msk.f32.vlgmr.msra.gmra.mxu1 %vm87_vm3, %v78_v21 }
  0xfb   :  { %v69_v23 = vpop.f32.mrf.mxu0 }
  0xfc   :  { %v70_v24 = vadd.f32 %v69_v23, %v31_v17 }
  0xfe   :  { %v79_v25 = vmax.f32 %v70_v24, 0.0 }
 0x100   :  { %504 = vmatmul.msk.f32.gmra.mxu1 %vm87_vm3, %v79_v25 }
 0x103   :  { %v72_v27 = vpop.f32.mrf.mxu0 }
 0x104   :  { %v73_v28 = vadd.f32 %v72_v27, %v31_v17 }
 0x106   :  { %v80_v29 = vmax.f32 %v73_v28, 0.0 }
 0x108   :  { %505 = vmatmul.msk.f32.gmra.mxu1 %vm87_vm3, %v80_v29 }
 0x10b   :  { %v75_v30 = vpop.f32.mrf.mxu0 }
 0x10c   :  { %v76_v31 = vadd.f32 %v75_v30, %v31_v17 }
 0x10e   :  { %v81_v32 = vmax.f32 %v76_v31, 0.0 }
 0x110   :  { %506 = vmatmul.msk.f32.gmra.mxu1 %vm87_vm3, %v81_v32 }
 0x111   :  { %v255_v57 = vpop.f32.mrf.mxu3 }
 0x119   :  { %v258_v58 = vpop.f32.mrf.mxu3 }
 0x121   :  { %v261_v59 = vpop.f32.mrf.mxu3 }
 0x175   :  { %v117_v41 = vpop.f32.mrf.mxu1 }
 0x176   :  { %v118_v42 = vadd.f32 %v117_v41, %v85_v39 }
 0x178   :  { %507 = vmatmul.msk.f32.vlgmr.msra.gmra.mxu2 %vm87_vm3, %v118_v42 }
 0x17d   :  { %v120_v44 = vpop.f32.mrf.mxu1 }
 0x17e   :  { %v121_v45 = vadd.f32 %v120_v44, %v85_v39 }
 0x180   :  { %508 = vmatmul.msk.f32.gmra.mxu2 %vm87_vm3, %v121_v45 }
 0x185   :  { %v123_v47 = vpop.f32.mrf.mxu1 }
 0x186   :  { %v124_v48 = vadd.f32 %v123_v47, %v85_v39 }
 0x188   :  { %509 = vmatmul.msk.f32.gmra.mxu2 %vm87_vm3, %v124_v48 }
 0x18d   :  { %v126_v50 = vpop.f32.mrf.mxu1 }
 0x18e   :  { %v127_v51 = vadd.f32 %v126_v50, %v85_v39 }
 0x190   :  { %510 = vmatmul.msk.f32.gmra.mxu2 %vm87_vm3, %v127_v51 }
 0x1fb   :  { %v174_v52 = vpop.f32.mrf.mxu2 }
 0x203   :  { %v177_v53 = vpop.f32.mrf.mxu2 }
 0x204   :  { %v549_v54 = vpack.i.bf16 %v174_v52, %v177_v53 }
 0x20b   :  { %v180_v55 = vpop.f32.mrf.mxu2 }
 0x213   :  { %v183_v56 = vpop.f32.mrf.mxu2 }
 0x214   :  { %518 = vmatpush.xpose.msk.msrb.mxu0 %vm87_vm3, %v183_v56  ;;  %v544_v9 = vpack.i.bf16 %v180_v55, %v183_v56 }
 0x218   :  { %519 = vmatpush.xpose.msk.msrb.mxu0 %vm87_vm3, %v180_v55 }
 0x21c   :  { %520 = vmatpush.xpose.msk.msrb.mxu0 %vm87_vm3, %v177_v53 }
 0x220   :  { %521 = vmatpush.xpose.msk.msrb.mxu0 %vm87_vm3, %v174_v52 }
 0x223   :  { %522 = vmatmul.msk.f32.vlgmr.msrb.gmra.mxu0 %vm87_vm3, %v255_v57 }
 0x22b   :  { %523 = vmatmul.msk.f32.gmra.mxu0 %vm87_vm3, %v258_v58 }
 0x233   :  { %524 = vmatmul.msk.f32.gmra.mxu0 %vm87_vm3, %v261_v59 }
 0x2a0   :  { %v311_v61 = vpop.f32.mrf.mxu0 }
 0x2a1   :  { %v312_v62 = vadd.f32 %v311_v61, %v265_v60 }
 0x2a3   :  { %v320_v63 = vsel %vm87_vm3, %v312_v62, -inf }
 0x2a4   :  { %321 = vmax.xlane.f32.xlu0 %v320_v63 }
 0x2a8   :  { %v314_v2 = vpop.f32.mrf.mxu0 }
 0x2a9   :  { %v315_v3 = vadd.f32 %v314_v2, %v267_v0 }
 0x2ab   :  { %v323_v4 = vsel %vm87_vm3, %v315_v3, -inf }
 0x2ac   :  { %324 = vmax.xlane.f32.xlu1 %v323_v4 }
 0x2b0   :  { %v317_v6 = vpop.f32.mrf.mxu0 }
 0x2b1   :  { %v318_v7 = vadd.f32 %v317_v6, %v269_v5 }
 0x2b3   :  { %v326_v8 = vsel %vm87_vm3, %v318_v7, -inf }
 0x2b4   :  { %327 = vmax.xlane.f32.xlu2 %v326_v8 }
 0x2c5   :  { %545 = vrot.lane.b32.xlu1 %v544_v9, %s577_s21 }
 0x2cd   :  { %560 = vrot.lane.b32.xlu1 %v644_v13, %s578_s2 }
 0x317   :  { %v322_v10 = vpop.xlane.xlu0 %321 }
 0x318   :  { %v329_v12 = vsub.f32 %v312_v62, %v322_v10  ;;  %v439_v10 = vperm.slane %v606_v1, 2 }
 0x31a   :  { %v332_v14 = vmul.f32 1.442695, %v329_v12 }
 0x31c   :  { %564 = vpow2.f32 %v332_v14 }
 0x31f   :  { %v325_v15 = vpop.xlane.xlu1 %324 }
 0x320   :  { %v330_v16 = vsub.f32 %v315_v3, %v325_v15 }
 0x322   :  { %v565_v17 = vpop.eup %564  ;;  %v334_v18 = vmul.f32 1.442695, %v330_v16 }
 0x323   :  { %v338_v19 = vsel %vm87_vm3, %v565_v17, 0.0 }
 0x324   :  { %566 = vpow2.f32 %v334_v18  ;;  %339 = vadd.xlane.f32.xlu2 %v338_v19 }
 0x327   :  { %v328_v20 = vpop.xlane.xlu2 %327 }
 0x328   :  { %v331_v21 = vsub.f32 %v318_v7, %v328_v20 }
 0x32a   :  { %v694_v22 = vpop.eup %566  ;;  %v336_v23 = vmul.f32 1.442695, %v331_v21 }
 0x32b   :  { %v341_v24 = vsel %vm87_vm3, %v694_v22, 0.0 }
 0x32c   :  { %568 = vpow2.f32 %v336_v23  ;;  %342 = vadd.xlane.f32.xlu0 %v341_v24 }
 0x332   :  { %v698_v25 = vpop.eup %568 }
 0x333   :  { %v344_v26 = vsel %vm87_vm3, %v698_v25, 0.0 }
 0x334   :  { %345 = vadd.xlane.f32.xlu2 %v344_v26 }
 0x337   :  { %v546_v27 = vpop.permute.xlu1 %545 }
 0x338   :  { %v547_v28 = vunpack.i.l.bf16 %v546_v27  ;;  %v548_v29 = vunpack.i.h.bf16 %v546_v27 }
 0x33a   :  { %425 = vmatpush.msrb.mxu1 %v547_v28 }
 0x33c   :  { %426 = vmatpush.msrb.mxu1 %v548_v29 }
 0x33f   :  { %v561_v7 = vpop.permute.xlu1 %560 }
 0x340   :  { %550 = vrot.lane.b32.xlu0 %v549_v54, %s577_s21  ;;  %v563_v8 = vunpack.i.h.bf16 %v561_v7  ;;  %v562_v9 = vunpack.i.l.bf16 %v561_v7 }
 0x348   :  { %453 = vrot.lane.b32.xlu0 %v439_v10, %s576_s14 }
 0x34c   :  { %555 = vrot.lane.b32.xlu2 %v637_v11, %s578_s2 }
 0x397   :  { %v340_v30 = vpop.xlane.xlu2 %339 }
 0x398   :  { %570 = vrcp.f32 %v340_v30  ;;  %v358_v41 = vand.u32 2147483648, %v340_v30  ;;  %vm352_vm5 = vweird.f32 %v340_v30  ;;  %v356_v43 = vand.u32 2147483647, %v340_v30 }
 0x39a   :  { %v359_v46 = vor.u32 1.1754944e-38, %v358_v41  ;;  %vm357_vm7 = vcmp.eq.f32.partialorder %v356_v43, 8.507059e+37 }
 0x39e   :  { %v571_v31 = vpop.eup %570 }
 0x39f   :  { %v343_v32 = vpop.xlane.xlu0 %342  ;;  %v348_v33 = vmul.f32 %v571_v31, %v340_v30  ;;  %vm353_vm4 = vweird.f32 %v571_v31 }
 0x3a0   :  { %572 = vrcp.f32 %v343_v32  ;;  %vm354_vm6 = vmor %vm352_vm5, %vm353_vm4  ;;  %v373_v51 = vand.u32 2147483648, %v343_v32  ;;  %vm367_vm9 = vweird.f32 %v343_v32  ;;  %v371_v54 = vand.u32 2147483647, %v343_v32 }
 0x3a1   :  { %v349_v34 = vsub.f32 1.0, %v348_v33 }
 0x3a2   :  { %v374_v57 = vor.u32 1.1754944e-38, %v373_v51  ;;  %vm372_vm11 = vcmp.eq.f32.partialorder %v371_v54, 8.507059e+37 }
 0x3a3   :  { %v350_v37 = vmul.f32 %v571_v31, %v349_v34 }
 0x3a5   :  { %v351_v39 = vadd.f32 %v571_v31, %v350_v37 }
 0x3a6   :  { %v573_v35 = vpop.eup %572 }
 0x3a7   :  { %v346_v36 = vpop.xlane.xlu2 %345  ;;  %v363_v38 = vmul.f32 %v573_v35, %v343_v32  ;;  %v355_v45 = vsel %vm354_vm6, %v571_v31, %v351_v39  ;;  %vm368_vm8 = vweird.f32 %v573_v35 }
 0x3a8   :  { %574 = vrcp.f32 %v346_v36  ;;  %v360_v48 = vsel %vm357_vm7, %v359_v46, %v355_v45  ;;  %vm369_vm10 = vmor %vm367_vm9, %vm368_vm8  ;;  %v388_v60 = vand.u32 2147483648, %v346_v36  ;;  %vm382_vm13 = vweird.f32 %v346_v36 }
 0x3a9   :  { %v364_v40 = vsub.f32 1.0, %v363_v38  ;;  %v361_v53 = vmul.f32 %v565_v17, %v360_v48  ;;  %v386_v62 = vand.u32 2147483647, %v346_v36 }
 0x3aa   :  { %v389_v0 = vor.u32 1.1754944e-38, %v388_v60 }
 0x3ab   :  { %v365_v13 = vmul.f32 %v573_v35, %v364_v40  ;;  %vm387_vm15 = vcmp.eq.f32.partialorder %v386_v62, 8.507059e+37 }
 0x3ad   :  { %v366_v50 = vadd.f32 %v573_v35, %v365_v13 }
 0x3ae   :  { %v575_v42 = vpop.eup %574 }
 0x3af   :  { %v378_v44 = vmul.f32 %v575_v42, %v346_v36  ;;  %v370_v56 = vsel %vm369_vm10, %v573_v35, %v366_v50  ;;  %vm383_vm12 = vweird.f32 %v575_v42  ;;  %v556_v4 = vpop.permute.xlu2 %555 }
 0x3b0   :  { %v375_v58 = vsel %vm372_vm11, %v374_v57, %v370_v56  ;;  %vm384_vm14 = vmor %vm382_vm13, %vm383_vm12  ;;  %v558_v5 = vunpack.i.h.bf16 %v556_v4  ;;  %v557_v6 = vunpack.i.l.bf16 %v556_v4 }
 0x3b1   :  { %v379_v49 = vsub.f32 1.0, %v378_v44  ;;  %v376_v61 = vmul.f32 %v694_v22, %v375_v58 }
 0x3b2   :  { %v551_v11 = vpop.permute.xlu0 %550  ;;  %477 = vmatpush.msrb.mxu2 %v557_v6 }
 0x3b3   :  { %v552_v47 = vunpack.i.l.bf16 %v551_v11  ;;  %v553_v52 = vunpack.i.h.bf16 %v551_v11  ;;  %v380_v55 = vmul.f32 %v575_v42, %v379_v49 }
 0x3b4   :  { %478 = vmatpush.msrb.mxu2 %v558_v5 }
 0x3b5   :  { %427 = vmatpush.msrb.mxu1 %v552_v47  ;;  %v381_v59 = vadd.f32 %v575_v42, %v380_v55 }
 0x3b6   :  { %479 = vmatpush.msrb.mxu2 %v562_v9 }
 0x3b7   :  { %428 = vmatpush.msrb.mxu1 %v553_v52  ;;  %v385_v63 = vsel %vm384_vm14, %v575_v42, %v381_v59 }
 0x3b8   :  { %525 = vmatmul.msk.f32.vlgmr.msrb.gmra.mxu1 %vm87_vm3, %v361_v53  ;;  %v390_v2 = vsel %vm387_vm15, %v389_v0, %v385_v63  ;;  %480 = vmatpush.msrb.mxu2 %v563_v8 }
 0x3b9   :  { %v391_v3 = vmul.f32 %v698_v25, %v390_v2 }
 0x3ba   :  { %v454_v16 = vpop.permute.xlu0 %453 }
 0x3c0   :  { %526 = vmatmul.msk.f32.gmra.mxu1 %vm87_vm3, %v376_v61 }
 0x3c8   :  { %527 = vmatmul.msk.f32.gmra.mxu1 %vm87_vm3, %v391_v3 }
 0x435   :  { %v430_v12 = vpop.f32.mrf.mxu1 }
 0x436   :  { %528 = vmatmul.msk.f32.vlgmr.msrb.gmra.mxu2 %vm87_vm3, %v430_v12 }
 0x43d   :  { %v433_v14 = vpop.f32.mrf.mxu1 }
 0x43e   :  { %529 = vmatmul.msk.f32.gmra.mxu2 %vm87_vm3, %v433_v14 }
 0x445   :  { %v436_v15 = vpop.f32.mrf.mxu1 }
 0x446   :  { %530 = vmatmul.msk.f32.gmra.mxu2 %vm87_vm3, %v436_v15 }
 0x4b9   :  { %v482_v17 = vpop.f32.mrf.mxu2 }
 0x4ba   :  { %v483_v18 = vadd.f32 %v482_v17, %v454_v16 }
 0x4bc   :  { %491 = vst.msk [vmem:[%s730_s3] sm:$0xff] %vm33_vm1, %v483_v18 }
 0x4c1   :  { %v485_v1 = vpop.f32.mrf.mxu2 }
 0x4c2   :  { %v486_v19 = vadd.f32 %v485_v1, %v454_v16 }
 0x4c4   :  { %492 = vst.msk [vmem:[%s730_s3 + $0x8] sm:$0xff] %vm33_vm1, %v486_v19 }
 0x4c9   :  { %v488_v20 = vpop.f32.mrf.mxu2 }
 0x4ca   :  { %v489_v21 = vadd.f32 %v488_v20, %v454_v16 }
 0x4cc   :  { %493 = vst.msk [vmem:[%s730_s3 + $0x10] sm:$0xff] %vm33_vm1, %v489_v21 }

</bundles_post_ra>
